<compile_context>
chip_gen: v5e
topology: v5e:2x2
jax: 0.10.0
libtpu: 0.0.40
codegen_flags: <defaults>
</compile_context>

<pallas_src>
import functools
import math

import jax
import jax.numpy as jnp
import numpy as np
from jax.experimental import pallas as pl
from jax.experimental.pallas import tpu as pltpu

DEGREE = 3   # cubic B-splines (scipy / concise EncodeSplines default)
LANE = 128   # TPU lane width


# ---------------------------------------------------------------------------
# Pallas kernel
# ---------------------------------------------------------------------------
def _bspline_kernel(x_ref, p_ref, o_ref, *, n_bases):
    """Fused B-spline expansion + per-feature weighted sum (+ bias).

    x_ref / o_ref: (TILE_ROWS, 128) lane-dense blocks (lanes cycle over the
    feature axis).  p_ref: packed lane-periodic parameter rows:
      row 0: 1/dk
      row 1: offset  (= t0/dk + DEGREE when n_cells <= 2, else t0/dk)
      row 2: bias
      rows 3 .. 3+n_bases-1: weight / 6
      rows 3+n_bases .. :    (weight[k+1]-weight[k]) / 6   [only n_cells == 2]
    """
    n_cells = n_bases - DEGREE          # data lives in cells [DEGREE, n_bases)
    W = 3                               # first weight row in p_ref

    x = x_ref[...]
    invdk = p_ref[0:1, :]
    off = p_ref[1:2, :]
    bias = p_ref[2:3, :]

    sel = None
    masks = None
    if n_cells <= 2:
        # um3 = u - DEGREE with u = (x - t0)/dk  (offset = t0/dk + DEGREE).
        um3 = x * invdk - off
        if n_cells == 2:
            # sel in {0., 1.}: which of the two knot cells this element is in.
            sel = (um3 >= 1.0).astype(jnp.float32)
            f = um3 - sel
        else:
            f = um3
    else:
        u = x * invdk - off             # offset = t0/dk
        cell = jnp.clip(jnp.floor(u), float(DEGREE), float(n_bases - 1))
        f = u - cell
        # Hoisted loop-invariant cell masks (reused for every basis index k).
        masks = [cell == float(DEGREE + c) for c in range(1, n_cells)]

    # The 4 nonzero cubic B-spline basis values at u, times 6 (the 1/6 is
    # folded into the weight rows by the wrapper).  Horner + partition of
    # unity (b0+b1+b2+b3 == 6) keep this at ~14 VALU ops.
    f2 = f * f
    b3 = f2 * f                         # f^3
    omf = 1.0 - f
    b0 = omf * omf * omf                # (1-f)^3
    b1 = f2 * (3.0 * f - 6.0) + 4.0     # 3f^3 - 6f^2 + 4
    b2 = 6.0 - b0 - b1 - b3             # -3f^3 + 3f^2 + 3f + 1
    bvals = (b0, b1, b2, b3)

    acc = bias                          # (1,128) bias row; broadcasts on add
    if n_cells == 1:
        for k in range(DEGREE + 1):
            acc = acc + bvals[k] * p_ref[W + k:W + k + 1, :]
    elif n_cells == 2:
        D = W + n_bases                 # first delta-weight row
        for k in range(DEGREE + 1):
            # w[k + sel] via a linear blend -- no compares/selects in the loop.
            wk = p_ref[W + k:W + k + 1, :] + sel * p_ref[D + k:D + k + 1, :]
            acc = acc + bvals[k] * wk
    else:
        for k in range(DEGREE + 1):
            wk = p_ref[W + k:W + k + 1, :]
            for c in range(1, n_cells):
                wk = jnp.where(masks[c - 1], p_ref[W + k + c:W + k + c + 1, :], wk)
            acc = acc + bvals[k] * wk

    o_ref[...] = acc.astype(o_ref.dtype)


# ---------------------------------------------------------------------------
# EncodeSplines "fit": per-feature uniform knots
# ---------------------------------------------------------------------------
def _fit_knots(x2d, n_bases):
    """Per-feature min/max, 0.1% range padding, mgcv-style uniform knots.

    Returns (t0, dk): first knot and knot spacing per feature.  In real use
    this is fit once and cached; pass the result via `knots=` to skip the
    per-call refit (one fewer full read of x).
    """
    data_min = jnp.min(x2d, axis=0)
    data_max = jnp.max(x2d, axis=0)
    rng = data_max - data_min
    start = data_min - 0.001 * rng
    end = data_max + 0.001 * rng
    dk = (end - start) / float(n_bases - DEGREE)
    # Guard degenerate constant features (rng == 0 -> dk == 0 -> 1/dk = inf).
    dk = jnp.where(dk > 0.0, dk, jnp.float32(1.0))
    t0 = start - float(DEGREE) * dk
    return t0, dk


def _pack_params(t0, dk, weight, bias, n_bases, in_features):
    """Pack all per-feature parameters into one lane-periodic (P, 128) tile."""
    n_cells = n_bases - DEGREE
    t0 = t0.astype(jnp.float32)
    inv_dk = (1.0 / dk).astype(jnp.float32)          # exact f32 reciprocal
    w_s = weight.astype(jnp.float32) * jnp.float32(1.0 / 6.0)   # fold 1/6
    if n_cells <= 2:
        off = t0 * inv_dk + jnp.float32(DEGREE)
    else:
        off = t0 * inv_dk
    rows = [inv_dk[None, :], off[None, :], bias.astype(jnp.float32)[None, :], w_s]
    if n_cells == 2:
        rows.append(w_s[1:] - w_s[:-1])              # (DEGREE+1, C) deltas
    p = jnp.concatenate(rows, axis=0)                # (P, C)
    return jnp.tile(p, (1, LANE // in_features))     # lane-periodic (P, 128)


# ---------------------------------------------------------------------------
# Wrapper
# ---------------------------------------------------------------------------
def bspline_layer(x, weight, bias, *, n_bases=5, tile_rows=2048, knots=None):
    N, L, C = x.shape
    assert n_bases > DEGREE, "need more bases than the spline degree"
    assert LANE % C == 0, "lane-periodic layout requires in_features | 128"
    assert weight.shape == (n_bases, C)

    xf = x.astype(jnp.float32).reshape(N * L, C)
    if knots is None:
        t0, dk = _fit_knots(xf, n_bases)     # TODO(synk): fit once & cache
    else:
        t0, dk = knots
    params = _pack_params(t0, dk, weight, bias, n_bases, C)
    n_prow = params.shape[0]

    total = N * L * C
    rows = pl.cdiv(total, LANE)
    rows_p = ((rows + 7) // 8) * 8            # (8,128)-aligned row count
    pad = rows_p * LANE - total

    xflat = xf.reshape(total)
    if pad:                                   # skip the copy when aligned
        xflat = jnp.pad(xflat, (0, pad))
    x2 = xflat.reshape(rows_p, LANE)

    # Big tiles for bandwidth (1 MiB blocks at the default); shrink for tiny
    # inputs.  cdiv grid + Pallas tail-block masking handle any remainder.
    tile_rows = max(8, min(tile_rows, rows_p))
    grid = pl.cdiv(rows_p, tile_rows)

    kernel = functools.partial(_bspline_kernel, n_bases=n_bases)
    out = pl.pallas_call(
        kernel,
        out_shape=jax.ShapeDtypeStruct((rows_p, LANE), jnp.float32),
        grid=(grid,),
        in_specs=[
            pl.BlockSpec((tile_rows, LANE), lambda i: (i, 0)),   # x rows
            pl.BlockSpec((n_prow, LANE), lambda i: (0, 0)),      # packed params
        ],
        out_specs=pl.BlockSpec((tile_rows, LANE), lambda i: (i, 0)),
        compiler_params=pltpu.CompilerParams(
            dimension_semantics=("parallel",),
            vmem_limit_bytes=48 * 1024 * 1024,
        ),
    )(x2, params)

    out = out.reshape(rows_p * LANE)
    if pad:
        out = out[:total]
    return out.reshape(N, L, C)


# ---------------------------------------------------------------------------
# Pure-JAX reference (Cox-de Boor recursion, same math, no Pallas)
# ---------------------------------------------------------------------------
def _bspline_basis(x, t0, dk, n_bases):
    """Cox-de Boor recursion for n_bases cubic B-spline basis functions."""
    n_knots = n_bases + DEGREE + 1
    t = [t0 + float(j) * dk for j in range(n_knots)]
    basis = [
        jnp.where((x >= t[j]) & (x < t[j + 1]), 1.0, 0.0).astype(jnp.float32)
        for j in range(n_knots - 1)
    ]
    for d in range(1, DEGREE + 1):
        nxt = []
        for j in range(len(basis) - 1):
            left = (x - t[j]) / (t[j + d] - t[j]) * basis[j]
            right = (t[j + d + 1] - x) / (t[j + d + 1] - t[j + 1]) * basis[j + 1]
            nxt.append(left + right)
        basis = nxt
    return basis  # length n_bases


def bspline_reference(x, weight, bias, *, n_bases=5, knots=None):
    N, L, C = x.shape
    xf = x.reshape(N * L, C).astype(jnp.float32)
    if knots is None:
        t0, dk = _fit_knots(xf, n_bases)
    else:
        t0, dk = knots
    basis = _bspline_basis(xf, t0.reshape(1, C), dk.reshape(1, C), n_bases)
    basis = jnp.stack(basis, axis=-1)                       # (M, C, n_bases)
    out = jnp.einsum("mcb,bc->mc", basis, weight.astype(jnp.float32))
    out = out + bias.astype(jnp.float32)[None, :]
    return out.reshape(N, L, C)


# ---------------------------------------------------------------------------
if __name__ == "__main__":
    n_batch, seq, in_features, n_bases = 2, 162, 4, 5   # docstring-like shapes

    key = jax.random.PRNGKey(0)
    kx, kw, kb = jax.random.split(key, 3)

    x = jax.random.normal(kx, (n_batch, seq, in_features), dtype=jnp.float32)

    # Deterministic init matching the module's parameter shapes:
    #   weight (n_bases, in_features): kaiming_uniform(a=sqrt(5)) bound
    #   bias (out_features=in_features,): uniform(-1/sqrt(fan_in), +)
    fan_in = in_features
    bound = 1.0 / math.sqrt(fan_in)
    weight = jax.random.uniform(
        kw, (n_bases, in_features), minval=-bound, maxval=bound, dtype=jnp.float32
    )
    bias = jax.random.uniform(
        kb, (in_features,), minval=-bound, maxval=bound, dtype=jnp.float32
    )

    # Fit once (EncodeSplines fit) and reuse for both kernel and reference —
    # this is the "cached knots" fast path that avoids a per-call refit.
    knots = _fit_knots(x.reshape(-1, in_features), n_bases)

    out = bspline_layer(x, weight, bias, n_bases=n_bases, knots=knots)
    out = jax.block_until_ready(out)

    ref = bspline_reference(x, weight, bias, n_bases=n_bases, knots=knots)
    assert out.shape == (n_batch, seq, in_features)
    np.testing.assert_allclose(np.asarray(out), np.asarray(ref), rtol=1e-5, atol=1e-5)

    print("KERNEL_OK")
</pallas_src>

<mosaic_0001>
module attributes {stable_mosaic.version = 11 : i64} {
  func.func @_bspline_kernel(%arg0: i32, %arg1: memref<16x128xf32, #tpu.memory_space<vmem>>, %arg2: memref<12x128xf32, #tpu.memory_space<vmem>>, %arg3: memref<16x128xf32, #tpu.memory_space<vmem>>) attributes {dimension_semantics = [#tpu.dimension_semantics<parallel>], iteration_bounds = array<i64: 1>, scalar_prefetch = 0 : i64, scratch_operands = 0 : i64, tpu.core_type = #tpu.core_type<tc>, window_params = [{transform_indices = @transform_0, window_bounds = array<i64: 16, 128>}, {pipeline_mode = #tpu.pipeline_mode<synchronous>, transform_indices = @transform_1, window_bounds = array<i64: 12, 128>}, {transform_indices = @transform_2, window_bounds = array<i64: 16, 128>}]} {
    %c0 = arith.constant 0 : index
    %c0_0 = arith.constant 0 : index
    %0 = vector.load %arg1[%c0, %c0_0] : memref<16x128xf32, #tpu.memory_space<vmem>>, vector<16x128xf32>
    %c0_1 = arith.constant 0 : index
    %c0_2 = arith.constant 0 : index
    %1 = vector.load %arg2[%c0_1, %c0_2] : memref<12x128xf32, #tpu.memory_space<vmem>>, vector<1x128xf32>
    %c1 = arith.constant 1 : index
    %c0_3 = arith.constant 0 : index
    %2 = vector.load %arg2[%c1, %c0_3] : memref<12x128xf32, #tpu.memory_space<vmem>>, vector<1x128xf32>
    %c2 = arith.constant 2 : index
    %c0_4 = arith.constant 0 : index
    %3 = vector.load %arg2[%c2, %c0_4] : memref<12x128xf32, #tpu.memory_space<vmem>>, vector<1x128xf32>
    %4 = vector.broadcast %1 : vector<1x128xf32> to vector<16x128xf32>
    %5 = arith.mulf %0, %4 : vector<16x128xf32>
    %6 = vector.broadcast %2 : vector<1x128xf32> to vector<16x128xf32>
    %7 = arith.subf %5, %6 : vector<16x128xf32>
    %cst = arith.constant 1.000000e+00 : f32
    %8 = vector.broadcast %cst : f32 to vector<16x128xf32>
    %9 = arith.cmpf oge, %7, %8 : vector<16x128xf32>
    %10 = arith.extui %9 : vector<16x128xi1> to vector<16x128xi32>
    %11 = arith.sitofp %10 : vector<16x128xi32> to vector<16x128xf32>
    %12 = arith.subf %7, %11 : vector<16x128xf32>
    %13 = arith.mulf %12, %12 : vector<16x128xf32>
    %14 = arith.mulf %13, %12 : vector<16x128xf32>
    %cst_5 = arith.constant 1.000000e+00 : f32
    %15 = vector.broadcast %cst_5 : f32 to vector<16x128xf32>
    %16 = arith.subf %15, %12 : vector<16x128xf32>
    %17 = arith.mulf %16, %16 : vector<16x128xf32>
    %18 = arith.mulf %17, %16 : vector<16x128xf32>
    %cst_6 = arith.constant 3.000000e+00 : f32
    %19 = vector.broadcast %cst_6 : f32 to vector<16x128xf32>
    %20 = arith.mulf %19, %12 : vector<16x128xf32>
    %cst_7 = arith.constant 6.000000e+00 : f32
    %21 = vector.broadcast %cst_7 : f32 to vector<16x128xf32>
    %22 = arith.subf %20, %21 : vector<16x128xf32>
    %23 = arith.mulf %13, %22 : vector<16x128xf32>
    %cst_8 = arith.constant 4.000000e+00 : f32
    %24 = vector.broadcast %cst_8 : f32 to vector<16x128xf32>
    %25 = arith.addf %23, %24 : vector<16x128xf32>
    %cst_9 = arith.constant 6.000000e+00 : f32
    %26 = vector.broadcast %cst_9 : f32 to vector<16x128xf32>
    %27 = arith.subf %26, %18 : vector<16x128xf32>
    %28 = arith.subf %27, %25 : vector<16x128xf32>
    %29 = arith.subf %28, %14 : vector<16x128xf32>
    %c3 = arith.constant 3 : index
    %c0_10 = arith.constant 0 : index
    %30 = vector.load %arg2[%c3, %c0_10] : memref<12x128xf32, #tpu.memory_space<vmem>>, vector<1x128xf32>
    %c8 = arith.constant 8 : index
    %c0_11 = arith.constant 0 : index
    %31 = vector.load %arg2[%c8, %c0_11] : memref<12x128xf32, #tpu.memory_space<vmem>>, vector<1x128xf32>
    %32 = vector.broadcast %31 : vector<1x128xf32> to vector<16x128xf32>
    %33 = arith.mulf %11, %32 : vector<16x128xf32>
    %34 = vector.broadcast %30 : vector<1x128xf32> to vector<16x128xf32>
    %35 = arith.addf %34, %33 : vector<16x128xf32>
    %36 = arith.mulf %18, %35 : vector<16x128xf32>
    %37 = vector.broadcast %3 : vector<1x128xf32> to vector<16x128xf32>
    %38 = arith.addf %37, %36 : vector<16x128xf32>
    %c4 = arith.constant 4 : index
    %c0_12 = arith.constant 0 : index
    %39 = vector.load %arg2[%c4, %c0_12] : memref<12x128xf32, #tpu.memory_space<vmem>>, vector<1x128xf32>
    %c9 = arith.constant 9 : index
    %c0_13 = arith.constant 0 : index
    %40 = vector.load %arg2[%c9, %c0_13] : memref<12x128xf32, #tpu.memory_space<vmem>>, vector<1x128xf32>
    %41 = vector.broadcast %40 : vector<1x128xf32> to vector<16x128xf32>
    %42 = arith.mulf %11, %41 : vector<16x128xf32>
    %43 = vector.broadcast %39 : vector<1x128xf32> to vector<16x128xf32>
    %44 = arith.addf %43, %42 : vector<16x128xf32>
    %45 = arith.mulf %25, %44 : vector<16x128xf32>
    %46 = arith.addf %38, %45 : vector<16x128xf32>
    %c5 = arith.constant 5 : index
    %c0_14 = arith.constant 0 : index
    %47 = vector.load %arg2[%c5, %c0_14] : memref<12x128xf32, #tpu.memory_space<vmem>>, vector<1x128xf32>
    %c10 = arith.constant 10 : index
    %c0_15 = arith.constant 0 : index
    %48 = vector.load %arg2[%c10, %c0_15] : memref<12x128xf32, #tpu.memory_space<vmem>>, vector<1x128xf32>
    %49 = vector.broadcast %48 : vector<1x128xf32> to vector<16x128xf32>
    %50 = arith.mulf %11, %49 : vector<16x128xf32>
    %51 = vector.broadcast %47 : vector<1x128xf32> to vector<16x128xf32>
    %52 = arith.addf %51, %50 : vector<16x128xf32>
    %53 = arith.mulf %29, %52 : vector<16x128xf32>
    %54 = arith.addf %46, %53 : vector<16x128xf32>
    %c6 = arith.constant 6 : index
    %c0_16 = arith.constant 0 : index
    %55 = vector.load %arg2[%c6, %c0_16] : memref<12x128xf32, #tpu.memory_space<vmem>>, vector<1x128xf32>
    %c11 = arith.constant 11 : index
    %c0_17 = arith.constant 0 : index
    %56 = vector.load %arg2[%c11, %c0_17] : memref<12x128xf32, #tpu.memory_space<vmem>>, vector<1x128xf32>
    %57 = vector.broadcast %56 : vector<1x128xf32> to vector<16x128xf32>
    %58 = arith.mulf %11, %57 : vector<16x128xf32>
    %59 = vector.broadcast %55 : vector<1x128xf32> to vector<16x128xf32>
    %60 = arith.addf %59, %58 : vector<16x128xf32>
    %61 = arith.mulf %14, %60 : vector<16x128xf32>
    %62 = arith.addf %54, %61 : vector<16x128xf32>
    %c0_18 = arith.constant 0 : index
    %c0_19 = arith.constant 0 : index
    %63 = vector.load %arg3[%c0_18, %c0_19] : memref<16x128xf32, #tpu.memory_space<vmem>>, vector<16x128xf32>
    tpu.vector_store %arg3[%c0_18, %c0_19], %62 {strides = array<i32>} : memref<16x128xf32, #tpu.memory_space<vmem>>, vector<16x128xf32>,
    return
  }
  func.func @transform_0(%arg0: i32) -> (i32, i32) {
    %c0_i32 = arith.constant 0 : i32
    %c0_i32_0 = arith.constant 0 : i32
    return %arg0, %c0_i32 : i32, i32
  }
  func.func @transform_1(%arg0: i32) -> (i32, i32) {
    %c0_i32 = arith.constant 0 : i32
    %c0_i32_0 = arith.constant 0 : i32
    %c0_i32_1 = arith.constant 0 : i32
    return %c0_i32, %c0_i32_0 : i32, i32
  }
  func.func @transform_2(%arg0: i32) -> (i32, i32) {
    %c0_i32 = arith.constant 0 : i32
    %c0_i32_0 = arith.constant 0 : i32
    return %arg0, %c0_i32 : i32, i32
  }
}

</mosaic_0001>

<bundles_post_ra>
// kernel: tpu_custom_call.1
= control target key start
LH: loop header
LB: loop body
LE: loop exit
PB: predicated region body
PF: predicated region fallthrough
CT: control target
= control target key end

     0   :  { %7 = vsyncpa [#allocation3], 0  ;;  %s296_s0 = inlined_call_operand.hbm [shape: f32[16,128], index: 0, kind: input, shape index: {}]   ;;  %s297_s1 = inlined_call_operand.hbm [shape: f32[12,128], index: 1, kind: input, shape index: {}]   ;;  %s298_s2 = inlined_call_operand.hbm [shape: f32[16,128], index: 2, kind: output, shape index: {}]  }
   0x1   :  { %8 = vsyncpa [#allocation6], 0 }
   0x2   :  { %9 = vsyncpa [#allocation4], 0  ;;  %s14_s11 = sshll.u32 %s296_s0, 4  ;;  %s257_s12 = smov [#allocation2]   ;;  %s15_s11 = int_to_ptr.hbm [resolvable:$true] %s14_s11 }
   0x3   :  { %s16_s13 = sshll.u32 %s257_s12, 4  ;;  %s27_s16 = sshll.u32 %s297_s1, 4  ;;  %s17_s13 = int_to_ptr.vmem [resolvable:$true] %s16_s13  ;;  %s28_s16 = int_to_ptr.hbm [resolvable:$true] %s27_s16 }
   0x4   :  { %s258_s17 = smov 128   ;;  %s259_s18 = smov 8  }
   0x5   :  { %22 = dma.hbm_to_vmem [thread:$0]  %s15_s11, 256, %s17_s13, [#allocation3], %s258_s17, %s258_s17, %s259_s18  }
   0x6   :  { %s260_s19 = smov [#allocation5]  }
   0x7   :  { %s29_s20 = sshll.u32 %s260_s19, 4  ;;  %s30_s20 = int_to_ptr.vmem [resolvable:$true] %s29_s20 }
   0x8   :  { %35 = dma.hbm_to_vmem [thread:$0]  %s28_s16, 256, %s30_s20, [#allocation6], %s258_s17, %s258_s17, %s259_s18  }
   0x9   :  { %251 = dma.done.wait [#allocation3], 256  }
   0xa   :  { %252 = vsyncadd [#allocation3], 4294967040 }
   0xb   :  { %253 = dma.done.wait [#allocation6], 256  }
   0xc   :  { %254 = vsyncadd [#allocation6], 4294967040  ;;  %v44_v0 = vld [vmem:[#allocation2] sm:$0xff]  ;;  %v168_v1 = vld [vmem:[#allocation5] ss:$0 sm:$0xff]  ;;  %v261_v9 = vmov 0.0  }
   0xd   :  { %v169_v2 = vld [vmem:[#allocation5 + $0x1] ss:$0 sm:$0xff]  ;;  %v50_v3 = vmul.f32 %v168_v1, %v44_v0  ;;  %v170_v5 = vld [vmem:[#allocation5 + $0x8] ss:$0 sm:$0xff]  ;;  %v173_v6 = vld [vmem:[#allocation5 + $0x9] ss:$0 sm:$0xff] }
   0xe   :  { %v175_v7 = vld [vmem:[#allocation5 + $0xa] ss:$0 sm:$0xff]  ;;  %v45_v8 = vld [vmem:[#allocation2 + $0x8] sm:$0xff]  ;;  %v171_v14 = vld [vmem:[#allocation5 + $0x3] ss:$0 sm:$0xff]  ;;  %s262_s0 = smov [#allocation7]  }
   0xf   :  { %v53_v4 = vsub.f32 %v50_v3, %v169_v2  ;;  %v51_v11 = vmul.f32 %v168_v1, %v45_v8  ;;  %v177_v16 = vld [vmem:[#allocation5 + $0xb] ss:$0 sm:$0xff]  ;;  %v174_v21 = vld [vmem:[#allocation5 + $0x4] ss:$0 sm:$0xff]  ;;  %v176_v23 = vld [vmem:[#allocation5 + $0x5] ss:$0 sm:$0xff] }
  0x10   :  { %v178_v29 = vld [vmem:[#allocation5 + $0x6] ss:$0 sm:$0xff]  ;;  %v172_v34 = vld [vmem:[#allocation5 + $0x2] ss:$0 sm:$0xff]  ;;  %s142_s1 = sshll.u32 %s262_s0, 4  ;;  %s144_s23 = sshll.u32 %s298_s2, 4  ;;  %s143_s1 = int_to_ptr.vmem [resolvable:$true] %s142_s1  ;;  %s145_s23 = int_to_ptr.hbm [resolvable:$true] %s144_s23 }
  0x11   :  { %vm55_vm0 = vcmp.ge.f32.partialorder %v53_v4, 1.0  ;;  %v54_v17 = vsub.f32 %v51_v11, %v169_v2 }
  0x12   :  { %v158_v10 = vsel %vm55_vm0, 1.0, %v261_v9 }
  0x13   :  { %v61_v12 = vsub.f32 %v53_v4, %v158_v10  ;;  %v90_v13 = vmul.f32 %v170_v5, %v158_v10  ;;  %v103_v15 = vmul.f32 %v173_v6, %v158_v10  ;;  %v115_v22 = vmul.f32 %v175_v7, %v158_v10 }
  0x14   :  { %vm56_vm1 = vcmp.ge.f32.partialorder %v54_v17, 1.0  ;;  %v127_v28 = vmul.f32 %v177_v16, %v158_v10 }
  0x15   :  { %v63_v18 = vmul.f32 %v61_v12, %v61_v12  ;;  %v67_v19 = vsub.f32 1.0, %v61_v12  ;;  %v73_v20 = vmul.f32 3.0, %v61_v12  ;;  %v93_v26 = vadd.f32 %v171_v14, %v90_v13 }
  0x16   :  { %v159_v27 = vsel %vm56_vm1, 1.0, %v261_v9  ;;  %v106_v35 = vadd.f32 %v174_v21, %v103_v15  ;;  %v118_v36 = vadd.f32 %v176_v23, %v115_v22  ;;  %v130_v45 = vadd.f32 %v178_v29, %v127_v28 }
  0x17   :  { %v69_v24 = vmul.f32 %v67_v19, %v67_v19  ;;  %v160_v25 = vadd.f32 -6.0, %v73_v20  ;;  %v62_v30 = vsub.f32 %v54_v17, %v159_v27  ;;  %v91_v31 = vmul.f32 %v170_v5, %v159_v27 }
  0x18   :  { %v104_v40 = vmul.f32 %v173_v6, %v159_v27  ;;  %v65_v41 = vmul.f32 %v63_v18, %v61_v12  ;;  %v116_v52 = vmul.f32 %v175_v7, %v159_v27  ;;  %v128_v56 = vmul.f32 %v177_v16, %v159_v27 }
  0x19   :  { %v71_v32 = vmul.f32 %v69_v24, %v67_v19  ;;  %v77_v33 = vmul.f32 %v160_v25, %v63_v18  ;;  %v64_v37 = vmul.f32 %v62_v30, %v62_v30  ;;  %v68_v38 = vsub.f32 1.0, %v62_v30 }
  0x1a   :  { %v74_v39 = vmul.f32 3.0, %v62_v30  ;;  %v94_v48 = vadd.f32 %v171_v14, %v91_v31  ;;  %v107_v55 = vadd.f32 %v174_v21, %v104_v40  ;;  %v132_v0 = vmul.f32 %v130_v45, %v65_v41 }
  0x1b   :  { %v79_v42 = vadd.f32 4.0, %v77_v33  ;;  %v81_v43 = vsub.f32 6.0, %v71_v32  ;;  %v95_v44 = vmul.f32 %v93_v26, %v71_v32  ;;  %v70_v46 = vmul.f32 %v68_v38, %v68_v38 }
  0x1c   :  { %v161_v47 = vadd.f32 -6.0, %v74_v39  ;;  %v66_v59 = vmul.f32 %v64_v37, %v62_v30  ;;  %v119_v1 = vadd.f32 %v176_v23, %v116_v52  ;;  %v131_v5 = vadd.f32 %v178_v29, %v128_v56 }
  0x1d   :  { %v83_v49 = vsub.f32 %v81_v43, %v79_v42  ;;  %v98_v50 = vadd.f32 %v172_v34, %v95_v44  ;;  %v108_v51 = vmul.f32 %v106_v35, %v79_v42  ;;  %v72_v53 = vmul.f32 %v70_v46, %v68_v38 }
  0x1e   :  { %v78_v54 = vmul.f32 %v161_v47, %v64_v37  ;;  %v133_v11 = vmul.f32 %v131_v5, %v66_v59 }
  0x1f   :  { %v85_v57 = vsub.f32 %v83_v49, %v65_v41  ;;  %v110_v58 = vadd.f32 %v108_v51, %v98_v50  ;;  %v82_v61 = vsub.f32 6.0, %v72_v53  ;;  %v96_v62 = vmul.f32 %v94_v48, %v72_v53 }
  0x20   :  { %v80_v60 = vadd.f32 4.0, %v78_v54 }
  0x21   :  { %v120_v63 = vmul.f32 %v118_v36, %v85_v57  ;;  %v99_v3 = vadd.f32 %v172_v34, %v96_v62 }
  0x22   :  { %v84_v2 = vsub.f32 %v82_v61, %v80_v60  ;;  %v109_v4 = vmul.f32 %v107_v55, %v80_v60 }
  0x23   :  { %v122_v6 = vadd.f32 %v120_v63, %v110_v58 }
  0x24   :  { %v86_v8 = vsub.f32 %v84_v2, %v66_v59  ;;  %v111_v7 = vadd.f32 %v109_v4, %v99_v3 }
  0x25   :  { %v134_v9 = vadd.f32 %v132_v0, %v122_v6 }
  0x26   :  { %v121_v10 = vmul.f32 %v119_v1, %v86_v8 }
  0x27   :  { %136 = vst [vmem:[#allocation7] sm:$0xff] %v134_v9 }
  0x28   :  { %v123_v12 = vadd.f32 %v121_v10, %v111_v7 }
  0x2a   :  { %v135_v13 = vadd.f32 %v133_v11, %v123_v12 }
  0x2c   :  { %137 = vst [vmem:[#allocation7 + $0x8] sm:$0xff] %v135_v13 }
  0x2d   :  { %150 = dma.vmem_to_hbm [thread:$0]  %s143_s1, 256, %s145_s23, [#allocation4], %s258_s17, %s258_s17, %s259_s18  }
  0x2e   :  { %255 = dma.done.wait [#allocation4], 256  }
  0x2f   :  { %256 = vsyncadd [#allocation4], 4294967040 }
  0x30   :  { %155 = vsyncpa [#allocation3], 1 }
  0x31   :  { %156 = vsyncpa [#allocation6], 1 }
  0x32   :  { %157 = vsyncpa [#allocation4], 1 }

</bundles_post_ra>
